<compile_context>
chip_gen: v7x
topology: tpu7x:2x2x1
jax: 0.10.0
libtpu: 0.0.40
codegen_flags: <defaults>
</compile_context>

<pallas_src>
import jax
import jax.numpy as jnp
from jax.experimental import pallas as pl
from jax.experimental.pallas import tpu as pltpu


def _disc_lsgan_kernel(x_ref, w1_ref, b1_ref, w2t_ref, b2_ref, out_ref, acc_ref):
    """One K-tile of fused discriminator forward (fake & real) + LSGAN disc loss.

    x_ref:   (2B, tk)  stacked [fake; real] rows (compute dtype, e.g. bf16)
    w1_ref:  (tk, H1)  layer-1 weight tile (compute dtype)
    b1_ref:  (1, H1)   layer-1 bias (f32, VMEM)
    w2t_ref: (1, H1)   layer-2 weight, pre-transposed (f32, VMEM)
    b2_ref:  (1, 1)    layer-2 bias (f32, SMEM)
    out_ref: (1, 1)    scalar loss (f32, SMEM)
    acc_ref: (2B, H1)  f32 VMEM accumulator, resident across the K grid
    """
    k = pl.program_id(0)

    @pl.when(k == 0)
    def _():
        acc_ref[...] = jnp.zeros_like(acc_ref)

    # Layer-1 partial matmul on the MXU, f32 accumulation across K tiles.
    acc_ref[...] += jnp.dot(x_ref[...], w1_ref[...],
                            preferred_element_type=jnp.float32)

    @pl.when(k == pl.num_programs(0) - 1)
    def _():
        two_b = acc_ref.shape[0]
        b = two_b // 2

        h = acc_ref[...] + b1_ref[...]           # (2B, H1), f32
        h = jnp.maximum(h, 0.2 * h)              # LeakyReLU(0.2): one VALU max

        # Layer 2 (H1 -> 1) as VPU multiply + lane reduction (no MXU pass).
        p = jnp.sum(h * w2t_ref[...], axis=-1, keepdims=True) + b2_ref[0, 0]  # (2B,1)

        # Rows [0, B) are fake (target 0), rows [B, 2B) are real (target 1).
        rows = jax.lax.broadcasted_iota(jnp.int32, (two_b, 1), 0)
        target = (rows >= b).astype(jnp.float32)

        # 0.5*(mean(pf^2) + mean((pr-1)^2)) == (0.5/B) * sum((p - target)^2)
        out_ref[0, 0] = jnp.sum((p - target) ** 2) * (0.5 / b)


def discriminator_lsgan_loss(real_nchw, fake_nchw, w1, b1, w2, b2,
                             *, compute_dtype=jnp.bfloat16):
    """Flatten NCHW -> (B, D), stack fake+real, run the fused Pallas kernel."""
    B = real_nchw.shape[0]
    D = int(real_nchw.size // B)
    H1 = w1.shape[-1]

    # Stack fake (target 0) then real (target 1): one layer-1 matmul for both passes.
    x = jnp.concatenate(
        [fake_nchw.reshape(B, D), real_nchw.reshape(B, D)], axis=0
    ).astype(compute_dtype)
    w1c = jnp.asarray(w1).reshape(D, H1).astype(compute_dtype)
    b1r = jnp.asarray(b1, jnp.float32).reshape(1, H1)      # handles (H1,) PyTorch bias
    w2t = jnp.asarray(w2, jnp.float32).reshape(1, H1)      # (H1, 1) -> (1, H1)
    b2s = jnp.asarray(b2, jnp.float32).reshape(1, 1)

    # K tile: largest 128-multiple (<=512) dividing D, else the full (un-tiled) D.
    tk = D
    for cand in (512, 256, 128):
        if D % cand == 0:
            tk = cand
            break
    nk = D // tk

    out = pl.pallas_call(
        _disc_lsgan_kernel,
        out_shape=jax.ShapeDtypeStruct((1, 1), jnp.float32),
        grid=(nk,),
        in_specs=[
            pl.BlockSpec((2 * B, tk), lambda k: (0, k)),   # stacked activations
            pl.BlockSpec((tk, H1), lambda k: (k, 0)),      # layer-1 weights
            pl.BlockSpec((1, H1), lambda k: (0, 0)),       # b1 (resident)
            pl.BlockSpec((1, H1), lambda k: (0, 0)),       # w2^T (resident)
            pl.BlockSpec(memory_space=pltpu.MemorySpace.SMEM),   # b2 scalar
        ],
        out_specs=pl.BlockSpec(memory_space=pltpu.MemorySpace.SMEM),  # (1,1) loss
        scratch_shapes=[pltpu.VMEM((2 * B, H1), jnp.float32)],
        compiler_params=pltpu.CompilerParams(
            dimension_semantics=("arbitrary",),   # K is a reduction axis
        ),
    )(x, w1c, b1r, w2t, b2s)
    return out[0, 0]


def _reference_loss(real_nchw, fake_nchw, w1, b1, w2, b2,
                    compute_dtype=jnp.float32):
    """Pure-JAX reference of DiscriminatorLoss.forward (LSGAN variant)."""
    B = real_nchw.shape[0]
    D = int(real_nchw.size // B)

    def disc(x):
        h = jnp.dot(x.reshape(B, D).astype(compute_dtype),
                    jnp.asarray(w1).astype(compute_dtype),
                    preferred_element_type=jnp.float32)
        h = h + jnp.asarray(b1, jnp.float32).reshape(1, -1)
        h = jnp.maximum(h, 0.2 * h)
        return h @ jnp.asarray(w2, jnp.float32) + jnp.asarray(b2, jnp.float32).reshape(1, 1)

    pf = disc(fake_nchw)   # fake.detach(): identical values in the forward pass
    pr = disc(real_nchw)
    return 0.5 * (jnp.mean(pf ** 2) + jnp.mean((pr - 1.0) ** 2))


if __name__ == "__main__":
    # Small shapes consistent with the module's forward: real/fake images NCHW.
    B, C, H, W = 2, 4, 16, 16
    HIDDEN = 32
    D = C * H * W

    key = jax.random.PRNGKey(0)
    k_real, k_fake, k_w1, k_w2 = jax.random.split(key, 4)

    real = jax.random.normal(k_real, (B, C, H, W), dtype=jnp.float32)
    fake = jax.random.normal(k_fake, (B, C, H, W), dtype=jnp.float32)

    # Deterministic synthetic discriminator parameters (MLP: D -> HIDDEN -> 1).
    w1 = jax.random.normal(k_w1, (D, HIDDEN), dtype=jnp.float32) * (1.0 / jnp.sqrt(D))
    b1 = jnp.zeros((HIDDEN,), dtype=jnp.float32)          # PyTorch-style (H1,) bias
    w2 = jax.random.normal(k_w2, (HIDDEN, 1), dtype=jnp.float32) * (1.0 / jnp.sqrt(HIDDEN))
    b2 = jnp.zeros((1,), dtype=jnp.float32)

    loss = jax.block_until_ready(discriminator_lsgan_loss(real, fake, w1, b1, w2, b2))

    # Tight check against a reference using the same bf16 layer-1 operands.
    ref_bf16 = jax.block_until_ready(
        _reference_loss(real, fake, w1, b1, w2, b2, compute_dtype=jnp.bfloat16))
    assert jnp.allclose(loss, ref_bf16, rtol=1e-4, atol=1e-5), (loss, ref_bf16)

    # Sanity check against full-f32 math (bf16 matmul inputs -> looser tolerance).
    ref_f32 = jax.block_until_ready(_reference_loss(real, fake, w1, b1, w2, b2))
    assert jnp.allclose(loss, ref_f32, rtol=5e-2, atol=5e-2), (loss, ref_f32)

    print("KERNEL_OK")
</pallas_src>

<mosaic_0001>
module attributes {stable_mosaic.version = 11 : i64} {
  func.func @_disc_lsgan_kernel(%arg0: i32, %arg1: memref<4x512xbf16, #tpu.memory_space<vmem>>, %arg2: memref<512x32xbf16, #tpu.memory_space<vmem>>, %arg3: memref<1x32xf32, #tpu.memory_space<vmem>>, %arg4: memref<1x32xf32, #tpu.memory_space<vmem>>, %arg5: memref<1x1xf32, #tpu.memory_space<smem>>, %arg6: memref<1x1xf32, #tpu.memory_space<smem>>, %arg7: memref<4x32xf32, #tpu.memory_space<vmem>>) attributes {dimension_semantics = [#tpu.dimension_semantics<arbitrary>], iteration_bounds = array<i64: 2>, scalar_prefetch = 0 : i64, scratch_operands = 1 : i64, tpu.core_type = #tpu.core_type<tc>, window_params = [{transform_indices = @transform_0, window_bounds = array<i64: 4, 512>}, {transform_indices = @transform_1, window_bounds = array<i64: 512, 32>}, {pipeline_mode = #tpu.pipeline_mode<synchronous>, transform_indices = @transform_2, window_bounds = array<i64: 1, 32>}, {pipeline_mode = #tpu.pipeline_mode<synchronous>, transform_indices = @transform_3, window_bounds = array<i64: 1, 32>}, {transform_indices = @transform_4, window_bounds = array<i64: 1, 1>}, {transform_indices = @transform_5, window_bounds = array<i64: 1, 1>}]} {
    %c0_i32 = arith.constant 0 : i32
    %0 = arith.cmpi eq, %arg0, %c0_i32 : i32
    %1 = arith.extui %0 : i1 to i32
    %c0_i32_0 = arith.constant 0 : i32
    %2 = arith.cmpi ne, %1, %c0_i32_0 : i32
    scf.if %2 {
      %cst_9 = arith.constant 0.000000e+00 : f32
      %12 = vector.broadcast %cst_9 : f32 to vector<4x32xf32>
      %c0_10 = arith.constant 0 : index
      %c0_11 = arith.constant 0 : index
      %13 = vector.load %arg7[%c0_10, %c0_11] : memref<4x32xf32, #tpu.memory_space<vmem>>, vector<4x32xf32>
      tpu.vector_store %arg7[%c0_10, %c0_11], %12 {strides = array<i32>} : memref<4x32xf32, #tpu.memory_space<vmem>>, vector<4x32xf32>,
    } else {
    }
    %c0 = arith.constant 0 : index
    %c0_1 = arith.constant 0 : index
    %3 = vector.load %arg7[%c0, %c0_1] : memref<4x32xf32, #tpu.memory_space<vmem>>, vector<4x32xf32>
    %c0_2 = arith.constant 0 : index
    %c0_3 = arith.constant 0 : index
    %4 = vector.load %arg1[%c0_2, %c0_3] : memref<4x512xbf16, #tpu.memory_space<vmem>>, vector<4x512xbf16>
    %c0_4 = arith.constant 0 : index
    %c0_5 = arith.constant 0 : index
    %5 = vector.load %arg2[%c0_4, %c0_5] : memref<512x32xbf16, #tpu.memory_space<vmem>>, vector<512x32xbf16>
    %cst = arith.constant dense<0.000000e+00> : vector<4x32xf32>
    %6 = tpu.matmul %4, %5, %cst {dimension_numbers = #tpu.dot_dimension_numbers<[1], [0], [0], [1], [0, 0, 1, 1], [], []>} : vector<4x512xbf16>, vector<512x32xbf16>, vector<4x32xf32> -> vector<4x32xf32>
    %7 = arith.addf %3, %6 : vector<4x32xf32>
    %c0_6 = arith.constant 0 : index
    %c0_7 = arith.constant 0 : index
    %8 = vector.load %arg7[%c0_6, %c0_7] : memref<4x32xf32, #tpu.memory_space<vmem>>, vector<4x32xf32>
    tpu.vector_store %arg7[%c0_6, %c0_7], %7 {strides = array<i32>} : memref<4x32xf32, #tpu.memory_space<vmem>>, vector<4x32xf32>,
    %c1_i32 = arith.constant 1 : i32
    %9 = arith.cmpi eq, %arg0, %c1_i32 : i32
    %10 = arith.extui %9 : i1 to i32
    %c0_i32_8 = arith.constant 0 : i32
    %11 = arith.cmpi ne, %10, %c0_i32_8 : i32
    scf.if %11 {
      %c0_9 = arith.constant 0 : index
      %c0_10 = arith.constant 0 : index
      %12 = vector.load %arg7[%c0_9, %c0_10] : memref<4x32xf32, #tpu.memory_space<vmem>>, vector<4x32xf32>
      %c0_11 = arith.constant 0 : index
      %c0_12 = arith.constant 0 : index
      %13 = vector.load %arg3[%c0_11, %c0_12] : memref<1x32xf32, #tpu.memory_space<vmem>>, vector<1x32xf32>
      %14 = vector.broadcast %13 : vector<1x32xf32> to vector<4x32xf32>
      %15 = arith.addf %12, %14 : vector<4x32xf32>
      %cst_13 = arith.constant 2.000000e-01 : f32
      %16 = vector.broadcast %cst_13 : f32 to vector<4x32xf32>
      %17 = arith.mulf %16, %15 : vector<4x32xf32>
      %18 = arith.maximumf %15, %17 : vector<4x32xf32>
      %c0_14 = arith.constant 0 : index
      %c0_15 = arith.constant 0 : index
      %19 = vector.load %arg4[%c0_14, %c0_15] : memref<1x32xf32, #tpu.memory_space<vmem>>, vector<1x32xf32>
      %20 = vector.broadcast %19 : vector<1x32xf32> to vector<4x32xf32>
      %21 = arith.mulf %18, %20 : vector<4x32xf32>
      %cst_16 = arith.constant dense<0.000000e+00> : vector<4xf32>
      %22 = vector.multi_reduction <add>, %21, %cst_16 [1] : vector<4x32xf32> to vector<4xf32>
      %23 = vector.shape_cast %22 : vector<4xf32> to vector<4x1xf32>
      %c0_17 = arith.constant 0 : index
      %c0_18 = arith.constant 0 : index
      %24 = memref.load %arg5[%c0_17, %c0_18] : memref<1x1xf32, #tpu.memory_space<smem>>
      %25 = vector.broadcast %24 : f32 to vector<4x1xf32>
      %26 = arith.addf %23, %25 : vector<4x1xf32>
      %27 = tpu.iota {dimensions = array<i32: 0>} : vector<4x1xi32>
      %c2_i32 = arith.constant 2 : i32
      %28 = vector.broadcast %c2_i32 : i32 to vector<4x1xi32>
      %29 = arith.cmpi sge, %27, %28 : vector<4x1xi32>
      %30 = arith.extui %29 : vector<4x1xi1> to vector<4x1xi32>
      %31 = arith.sitofp %30 : vector<4x1xi32> to vector<4x1xf32>
      %32 = arith.subf %26, %31 : vector<4x1xf32>
      %33 = arith.mulf %32, %32 : vector<4x1xf32>
      %34 = vector.shape_cast %33 : vector<4x1xf32> to vector<1x4x1xf32>
      %cst_19 = arith.constant dense<0.000000e+00> : vector<1xf32>
      %35 = vector.multi_reduction <add>, %34, %cst_19 [1, 2] : vector<1x4x1xf32> to vector<1xf32>
      %36 = vector.shape_cast %35 : vector<1xf32> to vector<1x1x1xf32>
      %37 = vector.extract %36[0, 0, 0] : f32 from vector<1x1x1xf32>
      %cst_20 = arith.constant 2.500000e-01 : f32
      %38 = arith.mulf %37, %cst_20 : f32
      %c0_21 = arith.constant 0 : index
      %c0_22 = arith.constant 0 : index
      %39 = memref.load %arg6[%c0_21, %c0_22] : memref<1x1xf32, #tpu.memory_space<smem>>
      memref.store %38, %arg6[%c0_21, %c0_22] : memref<1x1xf32, #tpu.memory_space<smem>>
    } else {
    }
    return
  }
  func.func @transform_0(%arg0: i32) -> (i32, i32) {
    %c0_i32 = arith.constant 0 : i32
    %c0_i32_0 = arith.constant 0 : i32
    return %c0_i32, %arg0 : i32, i32
  }
  func.func @transform_1(%arg0: i32) -> (i32, i32) {
    %c0_i32 = arith.constant 0 : i32
    %c0_i32_0 = arith.constant 0 : i32
    return %arg0, %c0_i32 : i32, i32
  }
  func.func @transform_2(%arg0: i32) -> (i32, i32) {
    %c0_i32 = arith.constant 0 : i32
    %c0_i32_0 = arith.constant 0 : i32
    %c0_i32_1 = arith.constant 0 : i32
    return %c0_i32, %c0_i32_0 : i32, i32
  }
  func.func @transform_3(%arg0: i32) -> (i32, i32) {
    %c0_i32 = arith.constant 0 : i32
    %c0_i32_0 = arith.constant 0 : i32
    %c0_i32_1 = arith.constant 0 : i32
    return %c0_i32, %c0_i32_0 : i32, i32
  }
  func.func @transform_4(%arg0: i32) -> (i32, i32) {
    %c0_i32 = arith.constant 0 : i32
    %c0_i32_0 = arith.constant 0 : i32
    %c0_i32_1 = arith.constant 0 : i32
    return %c0_i32, %c0_i32_0 : i32, i32
  }
  func.func @transform_5(%arg0: i32) -> (i32, i32) {
    %c0_i32 = arith.constant 0 : i32
    %c0_i32_0 = arith.constant 0 : i32
    %c0_i32_1 = arith.constant 0 : i32
    return %c0_i32, %c0_i32_0 : i32, i32
  }
}

</mosaic_0001>

<bundles_post_ra>
// kernel: tpu_custom_call.1
= control target key start
LH: loop header
LB: loop body
LE: loop exit
PB: predicated region body
PF: predicated region fallthrough
CT: control target
= control target key end

     0   :  { %s999_s0 = inlined_call_operand.vmem [shape: bf16[4,1024], index: 0, kind: input, shape index: {}]   ;;  %s1000_s1 = inlined_call_operand.vmem [shape: bf16[1024,32], index: 1, kind: input, shape index: {}]   ;;  %s1001_s2 = inlined_call_operand.vmem [shape: f32[1,32], index: 2, kind: input, shape index: {}]   ;;  %s1002_s3 = inlined_call_operand.vmem [shape: f32[1,32], index: 3, kind: input, shape index: {}]   ;;  %s1003_s4 = inlined_call_operand.<no memory space> [shape: f32[1,1], index: 4, kind: input, shape index: {}]   ;;  %s1004_s5 = inlined_call_operand.hbm [shape: f32[1,1], index: 5, kind: output, shape index: {}]  }
   0x1   :  { %10 = sst [smem:[#allocation3]] %s1003_s4 }
   0x2   :  { %11 = vsyncpa [#allocation5], 0  ;;  %s920_s20 = smov 0  }
   0x3 LB: > { %s926_s21 = sadd.s32 4294967295, %s881_s20   ;;  %p716_p0 = scmp.ge.s32.totalorder %s881_s20, 1  ;;  %s881_s20 = sphi %s920_s20, %s17_s20  }
   0x4   : > { %p196_p1 = scmp.lt.s32.totalorder %s881_s20, 3 }
   0x6   : > { %p197_p2 = pnand %p716_p0, %p196_p1 }
   0x7   : > { %s717_s4 = sshll.u32 (!%p197_p2), %s926_s21, 2  ;;  %s719_s22 = sshll.u32 (!%p197_p2), %s926_s21, 6 }
   0x8   : > { %200 = sbr.rel (%p197_p2) target bundleno = 667 (0x29b), region = 40  ;;  %p225_p3 = scmp.lt.s32.totalorder (!%p197_p2), %s717_s4, 7 }
   0x9   : > { %p231_p4 = scmp.lt.s32.totalorder (!%p197_p2), %s719_s22, 127  ;;  %p721_p5 = scmp.ne.s32.totalorder (!%p197_p2), %s926_s21, 0 }
   0xf   : > { %s1006_s4 = smov (!%p225_p3, %s717_s4), 7  ;;  %s1008_s22 = smov (!%p231_p4, %s719_s22), 127 }
  0x10   : > { %s718_s23 = sshll.u32 %s1006_s4, 1  ;;  %s720_s27 = sshll.u32 %s1008_s22, 2  ;;  %vm241_vm0 = vcmask (!%p721_p5), 257024   ;;  %v883_v0 = vmov (!%p721_p5), 0.0  }
  0x11   : > { %s935_s26 = scalar_lea.vmem %s999_s0, %s718_s23  ;;  %s940_s30 = scalar_lea.vmem %s1000_s1, %s720_s27  ;;  %242 = vst.msk [vmem:[#allocation2] sm:$0xf] (!%p721_p5), %vm241_vm0, %v883_v0 }
  0x12   : > { %240 = sbr.rel (%p721_p5) target bundleno = 25 (0x19), region = 44 }
  0x19 PF: > { %v826_v1 = vld [vmem:[%s940_s30 + $0x40] sm:$0xff]   ;;  %v830_v5 = vld [vmem:[%s940_s30 + $0x48] sm:$0xff]   ;;  %v834_v9 = vld [vmem:[%s940_s30 + $0x50] sm:$0xff]   ;;  %v314_v31 = vlaneseq  ;;  %v884_v35 = vmov 1983009808   ;;  %vm604_vm1 = vcmask 257024  }
  0x1a   : > { %v827_v2 = vld [vmem:[%s940_s30 + $0xc0] sm:$0xff]   ;;  %762 = vmatprep.subr.bf16.mxu0 %v826_v1  ;;  %v831_v6 = vld [vmem:[%s940_s30 + $0xc8] sm:$0xff]   ;;  %v835_v10 = vld [vmem:[%s940_s30 + $0xd0] sm:$0xff]   ;;  %v312_v36 = vunpack.c.l.s4 %v884_v35  ;;  %p754_p6 = scmp.ne.s32.totalorder %s926_s21, 1 }
  0x1b   : > { %v828_v3 = vld [vmem:[%s940_s30] sm:$0xff]   ;;  %784 = vmatprep.subr.bf16.mxu1 %v827_v2  ;;  %v832_v7 = vld [vmem:[%s940_s30 + $0x8] sm:$0xff]   ;;  %v836_v11 = vld [vmem:[%s940_s30 + $0x10] sm:$0xff]   ;;  %v315_v37 = vshrl.u32 %v314_v31, 7  ;;  %s632_s10 = sld [smem:[#allocation3]] (!%p754_p6)  ;;  %vm642_vm3 = vcmask (!%p754_p6), 3072  }
  0x1c   : > { %v829_v4 = vld [vmem:[%s940_s30 + $0x80] sm:$0xff]   ;;  %763 = vmatpush3.bf16.msra.mxu0 %v828_v3  ;;  %v833_v8 = vld [vmem:[%s940_s30 + $0x88] sm:$0xff]   ;;  %v837_v12 = vld [vmem:[%s940_s30 + $0x90] sm:$0xff]   ;;  %v313_v38 = vunpack.c.0.s8 %v312_v36  ;;  %v885_v3 = vmov (!%p754_p6), 0.0  }
  0x1d   : > { %785 = vmatpush3.bf16.msra.mxu1 %v829_v4  ;;  %764 = vmatprep.subr.bf16.mxu0 %v830_v5  ;;  %v838_v13 = vld [vmem:[%s940_s30 + $0x58] sm:$0xff]   ;;  %v842_v17 = vld [vmem:[%s940_s30 + $0x60] sm:$0xff]   ;;  %v846_v21 = vld [vmem:[%s940_s30 + $0x68] sm:$0xff]   ;;  %vm637_vm2 = vcmp.ge.s32.totalorder (!%p754_p6), %v315_v37, 2 }
  0x1e   : > { %786 = vmatprep.subr.bf16.mxu1 %v831_v6  ;;  %v839_v14 = vld [vmem:[%s940_s30 + $0xd8] sm:$0xff]   ;;  %v843_v18 = vld [vmem:[%s940_s30 + $0xe0] sm:$0xff]   ;;  %v847_v22 = vld [vmem:[%s940_s30 + $0xe8] sm:$0xff]   ;;  %v316_v40 = vsub.s32 %v313_v38, %v315_v37  ;;  %v757_v4 = vsel (!%p754_p6), %vm637_vm2, 1.0, %v885_v3 }
  0x1f   : > { %v840_v15 = vld [vmem:[%s940_s30 + $0x18] sm:$0xff]   ;;  %v844_v19 = vld [vmem:[%s940_s30 + $0x20] sm:$0xff]   ;;  %v848_v23 = vld [vmem:[%s940_s30 + $0x28] sm:$0xff]  }
  0x20   : > { %765 = vmatpush3.bf16.msra.mxu0 %v832_v7  ;;  %v841_v16 = vld [vmem:[%s940_s30 + $0x98] sm:$0xff]   ;;  %v845_v20 = vld [vmem:[%s940_s30 + $0xa0] sm:$0xff]   ;;  %v849_v24 = vld [vmem:[%s940_s30 + $0xa8] sm:$0xff]  }
  0x21   : > { %787 = vmatpush3.bf16.msra.mxu1 %v833_v8  ;;  %766 = vmatprep.subr.bf16.mxu0 %v834_v9  ;;  %v850_v25 = vld [vmem:[%s940_s30 + $0x70] sm:$0xff]   ;;  %v854_v29 = vld [vmem:[%s940_s30 + $0x78] sm:$0xff]   ;;  %v244_v34 = vld [vmem:[%s935_s26] sm:$0xff]  ;;  %v633_v2 = vstv (!%p754_p6), %s632_s10 }
  0x22   : > { %788 = vmatprep.subr.bf16.mxu1 %v835_v10  ;;  %v851_v26 = vld [vmem:[%s940_s30 + $0xf0] sm:$0xff]   ;;  %v855_v30 = vld [vmem:[%s940_s30 + $0xf8] sm:$0xff]   ;;  %v310_v39 = vcombine.high %v244_v34, %v244_v34  ;;  %v317_v41 = vrot.slane %v244_v34, %v316_v40  ;;  %v243_v53 = vld [vmem:[#allocation2] sm:$0xf] }
  0x23   : > { %v852_v27 = vld [vmem:[%s940_s30 + $0x30] sm:$0xff]   ;;  %v856_v32 = vld [vmem:[%s940_s30 + $0x38] sm:$0xff]   ;;  %v755_v59 = vld [vmem:[%s1001_s2] ss:$0 sm:$0xff] (!%p754_p6) }
  0x24   : > { %767 = vmatpush3.bf16.msra.mxu0 %v836_v11  ;;  %v853_v28 = vld [vmem:[%s940_s30 + $0xb0] sm:$0xff]   ;;  %v857_v33 = vld [vmem:[%s940_s30 + $0xb8] sm:$0xff]   ;;  %v324_v42 = vrot.slane %v310_v39, %v316_v40  ;;  %v325_v43 = vcombine.high %v317_v41, %v317_v41  ;;  %v756_v62 = vld [vmem:[%s1002_s3] ss:$0 sm:$0xff] (!%p754_p6) }
  0x25   : > { %789 = vmatpush3.bf16.msra.mxu1 %v837_v12  ;;  %768 = vmatprep.subr.bf16.mxu0 %v838_v13 }
  0x26   : > { %790 = vmatprep.subr.bf16.mxu1 %v839_v14  ;;  %v326_v44 = vcombine.high %v324_v42, %v324_v42  ;;  %555 = vmatprep.mubr.bf16.mxu0 %v325_v43 }
  0x28   : > { %769 = vmatpush3.bf16.msra.mxu0 %v840_v15  ;;  %595 = vmatprep.mubr.bf16.mxu1 %v326_v44 }
  0x29   : > { %791 = vmatpush3.bf16.msra.mxu1 %v841_v16  ;;  %770 = vmatprep.subr.bf16.mxu0 %v842_v17 }
  0x2a   : > { %792 = vmatprep.subr.bf16.mxu1 %v843_v18 }
  0x2c   : > { %771 = vmatpush3.bf16.msra.mxu0 %v844_v19 }
  0x2d   : > { %793 = vmatpush3.bf16.msra.mxu1 %v845_v20  ;;  %772 = vmatprep.subr.bf16.mxu0 %v846_v21 }
  0x2e   : > { %794 = vmatprep.subr.bf16.mxu1 %v847_v22 }
  0x30   : > { %773 = vmatpush3.bf16.msra.mxu0 %v848_v23 }
  0x31   : > { %795 = vmatpush3.bf16.msra.mxu1 %v849_v24  ;;  %774 = vmatprep.subr.bf16.mxu0 %v850_v25 }
  0x32   : > { %796 = vmatprep.subr.bf16.mxu1 %v851_v26 }
  0x34   : > { %775 = vmatpush3.bf16.msra.mxu0 %v852_v27 }
  0x35   : > { %797 = vmatpush3.bf16.msra.mxu1 %v853_v28  ;;  %776 = vmatprep.subr.bf16.mxu0 %v854_v29 }
  0x36   : > { %798 = vmatprep.subr.bf16.mxu1 %v855_v30 }
  0x38   : > { %777 = vmatpush3.bf16.msra.mxu0 %v856_v32 }
  0x39   : > { %799 = vmatpush3.bf16.msra.mxu1 %v857_v33 }
  0x3b   : > { %556 = vmatmul.mubr.bf16.vlgmr.msra.gmra.mrb[0].mxu0 %v317_v41 }
  0x3c   : > { %596 = vmatmul.mubr.bf16.vlgmr.msra.gmra.mrb[0].mxu1 %v324_v42 }
 0x10e   : > { %v778_v45 = vpop.f32.mrb[0].mxu0 }
 0x10f   : > { %v800_v46 = vpop.f32.mrb[0].mxu1  ;;  %v779_v47 = vpop.f32.mrb[1].mxu0 }
 0x110   : > { %v801_v48 = vpop.f32.mrb[1].mxu1  ;;  %v780_v49 = vadd.f32 %v779_v47, %v778_v45  ;;  %v781_v51 = vpop.f32.mrb[2].mxu0 }
 0x111   : > { %v802_v50 = vadd.f32 %v801_v48, %v800_v46  ;;  %v803_v52 = vpop.f32.mrb[2].mxu1  ;;  %v782_v54 = vpop.f32.mrb[3].mxu0  ;;  %609 = sbr.rel (%p754_p6) target bundleno = 652 (0x28c), region = 48 }
 0x112   : > { %v804_v55 = vpop.f32.mrb[3].mxu1 }
 0x113   : > { %v598_v56 = vadd.f32 %v802_v50, %v780_v49 }
 0x115   : > { %v603_v57 = vadd.f32 %v598_v56, %v243_v53 }
 0x117   : > { %605 = vst.msk [vmem:[#allocation2] sm:$0xf] %vm604_vm1, %v603_v57 }
 0x11e   : > { %v610_v58 = vld [vmem:[#allocation2] sm:$0xf] }
 0x11f   : > { %v618_v60 = vadd.f32 %v755_v59, %v610_v58 }
 0x121   : > { %v619_v61 = vmul.f32 0.2, %v618_v60 }
 0x123   : > { %v620_v63 = vmax.f32 %v618_v60, %v619_v61 }
 0x125   : > { %v628_v0 = vmul.f32 %v756_v62, %v620_v63 }
 0x127   : > { %v629_v1 = vsel %vm604_vm1, %v628_v0, 0.0 }
 0x128   : > { %630 = vadd.xlane.f32.xlu0 %v629_v1 }
 0x1b5   : > { %v631_v5 = vpop.xlane.xlu0 %630 }
 0x1b6   : > { %v634_v6 = vadd.f32 %v633_v2, %v631_v5 }
 0x1b8   : > { %v640_v7 = vsub.f32 %v634_v6, %v757_v4 }
 0x1ba   : > { %v641_v8 = vmul.f32 %v640_v7, %v640_v7 }
 0x1bc   : > { %v643_v9 = vsel %vm642_vm3, %v641_v8, 0.0 }
 0x1bd   : > { %644 = vadd.xlane.f32.xlu0 %v643_v9 }
 0x24a   : > { %v645_v10 = vpop.xlane.xlu0 %644 }
 0x24b   : > { %v646_v11 = vrot.slane %v645_v10, 4 }
 0x24d   : > { %v647_v12 = vadd.f32 %v646_v11, %v645_v10 }
 0x24f   : > { %v648_v13 = vrot.slane %v647_v12, 2 }
 0x251   : > { %v649_v14 = vadd.f32 %v648_v13, %v647_v12 }
 0x253   : > { %v650_v15 = vrot.slane %v649_v14, 1 }
 0x255   : > { %v651_v16 = vadd.f32 %v650_v15, %v649_v14 }
 0x257   : > { %806 = vpush %v651_v16 }
 0x288   : > { %s807_s11 = spop %806 }
 0x289   : > { %s653_s12 = smul.f32 0.25, %s807_s11 }
 0x28b   : > { %655 = sst [smem:[#allocation4]] %s653_s12 }
 0x28c PF: > { %p812_p7 = scmp.eq.s32.totalorder %s926_s21, 1  ;;  %s859_s15 = scalar_lea.hbm %s1004_s5, 16 }
 0x28d   : > { %p860_p8 = scmp.ne.s32.totalorder %s1004_s5, %s859_s15  ;;  %p865_p11 = scmp.lt.u32.totalorder %s859_s15, %s1004_s5 }
 0x28f   : > { %p861_p9 = pnand %p860_p8, %p812_p7 }
 0x291   : > { %p862_p10 = pneg %p861_p9 }
 0x293   : > { %p867_p12 = pnand %p865_p11, %p862_p10 }
 0x295   : > { %870 = shalt.err (!%p867_p12)
}
 0x296   : > { %s886_s4 = smov [#allocation4]  }
 0x297   : > { %809 = dma.smem_to_hbm (%p812_p7), %s886_s4, 16, %s1004_s5, [#allocation5]  }
 0x298   : > { %876 = dma.done.wait (%p812_p7), [#allocation5], 16  }
 0x299   : > { %878 = vsyncadd (%p812_p7), [#allocation5], 4294967280 }
 0x29a   : > { %669 = sfence }
 0x29b PF: > { %s17_s20 = sadd.s32 1, %s881_s20  }
 0x29c   : > { %p14_p13 = scmp.ge.s32.totalorder %s17_s20, 4  }
 0x29e   :  { %16 = sbr.rel (!%p14_p13) target bundleno = 3 (0x3), region = 79 }
 0x2a5   :  { %675 = vsyncpa [#allocation5], 1 }
 0x2a6   :  { %677 = vsyncpa [#allocation5 + $0x1], 1 }

</bundles_post_ra>
